<compile_context>
chip_gen: v6e
topology: v6e:2x2x1
jax: 0.10.0
libtpu: 0.0.40
codegen_flags: <defaults>
</compile_context>

<pallas_src>
import jax
import jax.numpy as jnp
from jax.experimental import pallas as pl
from jax.experimental.pallas import tpu as pltpu


def _round_up(n, m):
    return ((n + m - 1) // m) * m


def postprocess_kernel(x_ref, w1_ref, b1_ref, w2_ref, b2_ref, o_ref):
    # x_ref : (C, TN) bf16  -- last-time-step activations, batch on lanes
    # w1_ref: (H, C)  bf16  -- conv1 weight (kernel_size=1 squeezed)
    # b1_ref: (H, 1)  f32
    # w2_ref: (H, 1)  f32   -- conv2 weight kept as a column for VPU broadcast
    # b2_ref: (1, 1)  f32   -- SMEM scalar
    # o_ref : (1, TN) f32   -- lane-dense output row for this tile
    x = jnp.maximum(x_ref[...], 0)                                       # ReLU (bf16)
    h = jnp.dot(w1_ref[...], x, preferred_element_type=jnp.float32)      # conv1 (k=1) on MXU -> (H, TN)
    h = jnp.maximum(h + b1_ref[...], 0.0)                                # bias + ReLU
    # conv2 (H -> 1) as VPU multiply + cross-sublane reduce (not a width-1 MXU matmul)
    y = jnp.sum(h * w2_ref[...], axis=0, keepdims=True) + b2_ref[0, 0]   # (1, TN)
    o_ref[...] = y


def postprocess(x, w1, b1, w2, b2):
    """PostProcess forward.

    x:  (N, C_in, L)  -- same layout as the PyTorch module (NCL)
    w1: (H, C_in), b1: (H,)   -- conv1 weights (kernel_size=1 squeezed)
    w2: (1, H),   b2: (1,)    -- conv2 weights
    returns (N, 1) == net(x)[:, :, -1]
    """
    N, C, L = x.shape
    H = w1.shape[0]

    # Tile the batch along lanes; TN multiple of 128, capped for v7x's smaller VMEM.
    TN = min(4096, _round_up(max(N, 1), 128))
    N_pad = _round_up(N, TN)
    num_tiles = N_pad // TN

    # kernel_size=1 convs are position-independent and only the last position
    # survives the module's final slice -> feed only x[:, :, -1], batch on lanes.
    x_last_t = x[:, :, L - 1].T.astype(jnp.bfloat16)        # (C, N)
    if N_pad != N:
        x_last_t = jnp.pad(x_last_t, ((0, 0), (0, N_pad - N)))

    w1_b = w1.astype(jnp.bfloat16)                          # (H, C)
    b1_c = b1.reshape(H, 1).astype(jnp.float32)             # (H, 1)
    w2_c = w2.reshape(H, 1).astype(jnp.float32)             # (H, 1)
    b2_s = b2.reshape(1, 1).astype(jnp.float32)             # (1, 1) -> SMEM

    out_row = pl.pallas_call(
        postprocess_kernel,
        out_shape=jax.ShapeDtypeStruct((1, N_pad), jnp.float32),
        grid=(num_tiles,),
        in_specs=[
            pl.BlockSpec((C, TN), lambda i: (0, i)),                      # x tile marches over N
            pl.BlockSpec((H, C), lambda i: (0, 0)),                       # weights stay VMEM-resident
            pl.BlockSpec((H, 1), lambda i: (0, 0)),
            pl.BlockSpec((H, 1), lambda i: (0, 0)),
            pl.BlockSpec(memory_space=pltpu.MemorySpace.SMEM),            # b2 scalar in SMEM
        ],
        out_specs=pl.BlockSpec((1, TN), lambda i: (0, i)),
        compiler_params=pltpu.CompilerParams(
            dimension_semantics=("parallel",),
        ),
    )(x_last_t, w1_b, b1_c, w2_c, b2_s)

    return out_row[0, :N].reshape(N, 1)


def postprocess_ref(x, w1, b1, w2, b2):
    """Pure-JAX reference matching the PyTorch forward (full-length, f32)."""
    h = jnp.maximum(x, 0.0)                                   # ReLU on (N, C, L)
    h = jnp.einsum('hc,ncl->nhl', w1, h) + b1[None, :, None]  # Conv1d k=1
    h = jnp.maximum(h, 0.0)
    y = jnp.einsum('oh,nhl->nol', w2, h) + b2[None, :, None]  # Conv1d k=1
    return y[:, :, -1]                                        # (N, 1)


if __name__ == "__main__":
    num_inputs = 32
    post_channels = 16
    N, L = 2, 8

    key = jax.random.PRNGKey(0)
    kx, k1, k2, k3, k4 = jax.random.split(key, 5)

    x = jax.random.normal(kx, (N, num_inputs, L), dtype=jnp.float32)
    # Deterministic synthetic parameters (Conv1d kernel_size=1 weights squeezed).
    w1 = jax.random.normal(k1, (post_channels, num_inputs), dtype=jnp.float32) * 0.1
    b1 = jax.random.normal(k2, (post_channels,), dtype=jnp.float32) * 0.1
    w2 = jax.random.normal(k3, (1, post_channels), dtype=jnp.float32) * 0.1
    b2 = jax.random.normal(k4, (1,), dtype=jnp.float32) * 0.1

    out = postprocess(x, w1, b1, w2, b2)
    jax.block_until_ready(out)

    ref = postprocess_ref(x, w1, b1, w2, b2)
    assert out.shape == (N, 1), out.shape
    # bf16 MXU path -> relaxed tolerance vs. the f32 reference.
    assert jnp.allclose(out, ref, atol=2e-2, rtol=2e-2), (out, ref)

    print("KERNEL_OK")
</pallas_src>

<mosaic_0001>
module attributes {stable_mosaic.version = 11 : i64} {
  func.func @postprocess_kernel(%arg0: i32, %arg1: memref<32x128xbf16, #tpu.memory_space<vmem>>, %arg2: memref<16x32xbf16, #tpu.memory_space<vmem>>, %arg3: memref<16x1xf32, #tpu.memory_space<vmem>>, %arg4: memref<16x1xf32, #tpu.memory_space<vmem>>, %arg5: memref<1x1xf32, #tpu.memory_space<smem>>, %arg6: memref<1x128xf32, #tpu.memory_space<vmem>>) attributes {dimension_semantics = [#tpu.dimension_semantics<parallel>], iteration_bounds = array<i64: 1>, scalar_prefetch = 0 : i64, scratch_operands = 0 : i64, tpu.core_type = #tpu.core_type<tc>, window_params = [{transform_indices = @transform_0, window_bounds = array<i64: 32, 128>}, {pipeline_mode = #tpu.pipeline_mode<synchronous>, transform_indices = @transform_1, window_bounds = array<i64: 16, 32>}, {pipeline_mode = #tpu.pipeline_mode<synchronous>, transform_indices = @transform_2, window_bounds = array<i64: 16, 1>}, {pipeline_mode = #tpu.pipeline_mode<synchronous>, transform_indices = @transform_3, window_bounds = array<i64: 16, 1>}, {transform_indices = @transform_4, window_bounds = array<i64: 1, 1>}, {transform_indices = @transform_5, window_bounds = array<i64: 1, 128>}]} {
    %c0 = arith.constant 0 : index
    %c0_0 = arith.constant 0 : index
    %0 = vector.load %arg1[%c0, %c0_0] : memref<32x128xbf16, #tpu.memory_space<vmem>>, vector<32x128xbf16>
    %cst = arith.constant 0.000000e+00 : bf16
    %1 = vector.broadcast %cst : bf16 to vector<32x128xbf16>
    %2 = arith.maximumf %0, %1 : vector<32x128xbf16>
    %c0_1 = arith.constant 0 : index
    %c0_2 = arith.constant 0 : index
    %3 = vector.load %arg2[%c0_1, %c0_2] : memref<16x32xbf16, #tpu.memory_space<vmem>>, vector<16x32xbf16>
    %cst_3 = arith.constant dense<0.000000e+00> : vector<16x128xf32>
    %4 = tpu.matmul %3, %2, %cst_3 {dimension_numbers = #tpu.dot_dimension_numbers<[1], [0], [0], [1], [0, 0, 1, 1], [], []>} : vector<16x32xbf16>, vector<32x128xbf16>, vector<16x128xf32> -> vector<16x128xf32>
    %c0_4 = arith.constant 0 : index
    %c0_5 = arith.constant 0 : index
    %5 = vector.load %arg3[%c0_4, %c0_5] : memref<16x1xf32, #tpu.memory_space<vmem>>, vector<16x1xf32>
    %6 = vector.broadcast %5 : vector<16x1xf32> to vector<16x128xf32>
    %7 = arith.addf %4, %6 : vector<16x128xf32>
    %cst_6 = arith.constant 0.000000e+00 : f32
    %8 = vector.broadcast %cst_6 : f32 to vector<16x128xf32>
    %9 = arith.maximumf %7, %8 : vector<16x128xf32>
    %c0_7 = arith.constant 0 : index
    %c0_8 = arith.constant 0 : index
    %10 = vector.load %arg4[%c0_7, %c0_8] : memref<16x1xf32, #tpu.memory_space<vmem>>, vector<16x1xf32>
    %11 = vector.broadcast %10 : vector<16x1xf32> to vector<16x128xf32>
    %12 = arith.mulf %9, %11 : vector<16x128xf32>
    %cst_9 = arith.constant dense<0.000000e+00> : vector<128xf32>
    %13 = vector.multi_reduction <add>, %12, %cst_9 [0] : vector<16x128xf32> to vector<128xf32>
    %14 = vector.shape_cast %13 : vector<128xf32> to vector<1x128xf32>
    %c0_10 = arith.constant 0 : index
    %c0_11 = arith.constant 0 : index
    %15 = memref.load %arg5[%c0_10, %c0_11] : memref<1x1xf32, #tpu.memory_space<smem>>
    %16 = vector.broadcast %15 : f32 to vector<1x128xf32>
    %17 = arith.addf %14, %16 : vector<1x128xf32>
    %c0_12 = arith.constant 0 : index
    %c0_13 = arith.constant 0 : index
    %18 = vector.load %arg6[%c0_12, %c0_13] : memref<1x128xf32, #tpu.memory_space<vmem>>, vector<1x128xf32>
    tpu.vector_store %arg6[%c0_12, %c0_13], %17 {strides = array<i32>} : memref<1x128xf32, #tpu.memory_space<vmem>>, vector<1x128xf32>,
    return
  }
  func.func @transform_0(%arg0: i32) -> (i32, i32) {
    %c0_i32 = arith.constant 0 : i32
    %c0_i32_0 = arith.constant 0 : i32
    return %c0_i32, %arg0 : i32, i32
  }
  func.func @transform_1(%arg0: i32) -> (i32, i32) {
    %c0_i32 = arith.constant 0 : i32
    %c0_i32_0 = arith.constant 0 : i32
    %c0_i32_1 = arith.constant 0 : i32
    return %c0_i32, %c0_i32_0 : i32, i32
  }
  func.func @transform_2(%arg0: i32) -> (i32, i32) {
    %c0_i32 = arith.constant 0 : i32
    %c0_i32_0 = arith.constant 0 : i32
    %c0_i32_1 = arith.constant 0 : i32
    return %c0_i32, %c0_i32_0 : i32, i32
  }
  func.func @transform_3(%arg0: i32) -> (i32, i32) {
    %c0_i32 = arith.constant 0 : i32
    %c0_i32_0 = arith.constant 0 : i32
    %c0_i32_1 = arith.constant 0 : i32
    return %c0_i32, %c0_i32_0 : i32, i32
  }
  func.func @transform_4(%arg0: i32) -> (i32, i32) {
    %c0_i32 = arith.constant 0 : i32
    %c0_i32_0 = arith.constant 0 : i32
    %c0_i32_1 = arith.constant 0 : i32
    return %c0_i32, %c0_i32_0 : i32, i32
  }
  func.func @transform_5(%arg0: i32) -> (i32, i32) {
    %c0_i32 = arith.constant 0 : i32
    %c0_i32_0 = arith.constant 0 : i32
    return %c0_i32, %arg0 : i32, i32
  }
}

</mosaic_0001>

<bundles_post_ra>
// kernel: tpu_custom_call.1
= control target key start
LH: loop header
LB: loop body
LE: loop exit
PB: predicated region body
PF: predicated region fallthrough
CT: control target
= control target key end

     0   :  { %v192_v2 = vmov 0.0   ;;  %v193_v3 = vmov 0   ;;  %vm194_vm0 = vmmov 0   ;;  %s259_s0 = inlined_call_operand.vmem [shape: bf16[32,128], index: 0, kind: input, shape index: {}]   ;;  %s260_s1 = inlined_call_operand.vmem [shape: bf16[16,32], index: 1, kind: input, shape index: {}]   ;;  %s261_s2 = inlined_call_operand.vmem [shape: f32[16,1], index: 2, kind: input, shape index: {}]   ;;  %s262_s3 = inlined_call_operand.vmem [shape: f32[16,1], index: 3, kind: input, shape index: {}]   ;;  %s263_s4 = inlined_call_operand.<no memory space> [shape: f32[1,1], index: 4, kind: input, shape index: {}]   ;;  %s264_s5 = inlined_call_operand.hbm [shape: f32[1,128], index: 5, kind: output, shape index: {}]  }
   0x1   :  { %v25_v0 = vld [vmem:[%s259_s0 + $0x8] sm:$0xf]  ;;  %v26_v1 = vld [vmem:[%s259_s0 + $0xc] sm:$0xf]  ;;  %155 = vmatprep.subr.bf16.mxu0 %v192_v2  ;;  %v23_v6 = vld [vmem:[%s259_s0] sm:$0xf]  ;;  %167 = vset.pattern.permute.xlu0 %v193_v3 }
   0x2   :  { %v29_v4 = vmax.bf16 %v193_v3, %v25_v0  ;;  %v30_v5 = vmax.bf16 %v193_v3, %v26_v1  ;;  %v24_v7 = vld [vmem:[%s259_s0 + $0x4] sm:$0xf]  ;;  %v27_v8 = vmax.bf16 %v193_v3, %v23_v6  ;;  %159 = vmatprep.mubr.msk.bf16.mxu0 %vm194_vm0, %v192_v2  ;;  %168 = vset.pattern.permute.xlu1 %v193_v3  ;;  %v34_v13 = vld [vmem:[%s261_s2 + $0x8] sm:$0xff] }
   0x3   :  { %v28_v9 = vmax.bf16 %v193_v3, %v24_v7  ;;  %v33_v10 = vld [vmem:[%s261_s2] sm:$0xff] }
   0x4   :  { %v150_v11 = vcombine.low %v29_v4, %v30_v5  ;;  %37 = vperm.xlu0 %167, %v33_v10   ;;  %v109_v12 = vld [vmem:[%s262_s3] sm:$0xff] }
   0x5   :  { %113 = vperm.xlu1 %168, %v109_v12  }
   0x6   :  { %11 = vsyncpa [#allocation4], 0  ;;  %156 = vmatpush3.bf16.msra.mxu0 %v150_v11  ;;  %v149_v14 = vcombine.low %v27_v8, %v28_v9  ;;  %v110_v15 = vld [vmem:[%s262_s3 + $0x8] sm:$0xff]  ;;  %v169_v16 = vld [vmem:[%s260_s1] sm:$0xff]   ;;  %vm62_vm1 = vcmask 261120   ;;  %v131_v37 = vstv %s263_s4  ;;  %s195_s3 = smov [#allocation3]  }
   0x7   :  { %157 = vmatprep.subr.bf16.mxu0 %v192_v2  ;;  %s140_s10 = sshll.u32 %s195_s3, 4  ;;  %s141_s10 = int_to_ptr.vmem [resolvable:$true] %s140_s10 }
   0x8   :  { %42 = vperm.xlu0 %167, %v34_v13   ;;  %s170_s11 = scalar_lea.vmem %s141_s10, 16  ;;  %s174_s12 = scalar_lea.vmem %s141_s10, 32 }
   0x9   :  { %118 = vperm.xlu1 %168, %v110_v15   ;;  %p171_p0 = scmp.ne.s32.totalorder %s141_s10, %s170_s11  ;;  %p175_p1 = scmp.lt.s32.totalorder %s141_s10, %s141_s10 }
   0xa   :  { %158 = vmatpush3.bf16.msra.mxu0 %v149_v14  ;;  %p176_p2 = scmp.lt.s32.totalorder %s174_s12, %s170_s11 }
   0xc   :  { %p177_p3 = por %p176_p2, %p175_p1 }
   0xd   :  { %160 = vmatmul.mubr.msk.bf16.vlgmr.msra.gmra.mxu0 %vm62_vm1, %v169_v16 }
   0xe   :  { %p178_p4 = pnand %p177_p3, %p171_p0 }
  0x7f   :  { %v38_v17 = vpop.permute.xlu0 %37 }
  0x80   :  { %v114_v20 = vpop.permute.xlu1 %113 }
  0x83   :  { %v43_v22 = vpop.permute.xlu0 %42 }
  0x84   :  { %v119_v28 = vpop.permute.xlu1 %118 }
  0xcd   :  { %v100_v18 = vpop.f32.mrf.mxu0 }
  0xce   :  { %v101_v19 = vadd.f32 %v100_v18, %v38_v17 }
  0xcf   :  { %v161_v21 = vpop.f32.mrf.mxu0 }
  0xd0   :  { %v107_v24 = vmax.f32 %v101_v19, 0.0 }
  0xd1   :  { %v103_v23 = vpop.f32.mrf.mxu0 }
  0xd2   :  { %v104_v25 = vadd.f32 %v103_v23, %v43_v22  ;;  %v121_v29 = vmul.f32 %v114_v20, %v107_v24 }
  0xd3   :  { %v162_v26 = vpop.f32.mrf.mxu0 }
  0xd4   :  { %v108_v27 = vmax.f32 %v104_v25, 0.0 }
  0xd6   :  { %v122_v30 = vmul.f32 %v119_v28, %v108_v27 }
  0xd8   :  { %v123_v31 = vadd.f32 %v122_v30, %v121_v29 }
  0xda   :  { %v124_v32 = vrot.slane %v123_v31, 4 }
  0xdc   :  { %v125_v33 = vadd.f32 %v124_v32, %v123_v31 }
  0xde   :  { %v126_v34 = vrot.slane %v125_v33, 2 }
  0xe0   :  { %v127_v35 = vadd.f32 %v126_v34, %v125_v33 }
  0xe2   :  { %v128_v36 = vrot.slane %v127_v35, 1 }
  0xe4   :  { %v129_v38 = vadd.f32 %v128_v36, %v127_v35 }
  0xe6   :  { %v132_v39 = vadd.f32 %v131_v37, %v129_v38 }
  0xe8   :  { %133 = vst [vmem:[#allocation3] sm:$0x1] %v132_v39 }
  0xe9   :  { %181 = shalt.err (!%p178_p4)
}
  0xea   :  { %143 = dma.vmem_to_hbm [thread:$0]  %s141_s10, 16, %s264_s5, [#allocation4]  }
  0xeb   :  { %190 = dma.done.wait [#allocation4], 16  }
  0xec   :  { %191 = vsyncadd [#allocation4], 4294967280 }
  0xed   :  { %147 = vsyncpa [#allocation4], 1 }

</bundles_post_ra>
